<compile_context>
chip_gen: v7x
topology: tpu7x:2x2x1
jax: 0.10.0
libtpu: 0.0.40
codegen_flags: <defaults>
</compile_context>

<pallas_src>
import functools
import math

import jax
import jax.numpy as jnp
from jax.experimental import pallas as pl
from jax.experimental.pallas import tpu as pltpu

_LANES = 128


def _acos(x):
    """arccos via Abramowitz-Stegun 4.4.45 (|err| <= 2e-8 on [-1, 1])."""
    # TODO(synk): switch to jnp.arccos if/when Mosaic guarantees a lowering.
    ax = jnp.abs(x)
    p = jnp.float32(-0.0012624911)
    p = p * ax + jnp.float32(0.0066700901)
    p = p * ax + jnp.float32(-0.0170881256)
    p = p * ax + jnp.float32(0.0308918810)
    p = p * ax + jnp.float32(-0.0501743046)
    p = p * ax + jnp.float32(0.0889789874)
    p = p * ax + jnp.float32(-0.2145988016)
    p = p * ax + jnp.float32(1.5707963050)
    acos_pos = jnp.sqrt(jnp.maximum(1.0 - ax, 0.0)) * p
    return jnp.where(x >= 0.0, acos_pos, jnp.float32(math.pi) - acos_pos)


def _fusion_loss_kernel(pred_ref, tgt_ref, sums_ref, *, hw, tile_rows, needs_mask):
    # pred_ref / tgt_ref: (1, C, tile_rows, 128); sums_ref: (1, 8, 128)
    p = pred_ref[0].astype(jnp.float32)          # (C, R, 128)
    t = tgt_ref[0].astype(jnp.float32)

    # ---- MSE + SmoothL1 (beta=1) per-tile partial sums.
    # Padded pixels contribute d = 0, so no masking is needed here.
    d = p - t
    sq = d * d
    mse_sum = jnp.sum(sq)
    ad = jnp.abs(d)
    smooth_sum = jnp.sum(jnp.where(ad < 1.0, 0.5 * sq, ad - 0.5))

    # ---- SAM: channel reductions are plain adds over the leading C axis.
    eps = 1e-8
    dot = jnp.sum(p * t, axis=0)                 # (R, 128)
    pn = jnp.sqrt(jnp.sum(p * p, axis=0))
    tn = jnp.sqrt(jnp.sum(t * t, axis=0))
    cos = jnp.clip(dot / (pn * tn + eps), -1.0, 1.0)
    ang = _acos(cos)                             # (R, 128)

    if needs_mask:
        # Padded pixels give cos = 0 -> acos = pi/2; mask them out of SAM.
        r_idx = jax.lax.broadcasted_iota(jnp.int32, (tile_rows, _LANES), 0)
        l_idx = jax.lax.broadcasted_iota(jnp.int32, (tile_rows, _LANES), 1)
        gidx = (pl.program_id(1) * tile_rows + r_idx) * _LANES + l_idx
        ang = jnp.where(gidx < hw, ang, 0.0)
    sam_sum = jnp.sum(ang)

    # Lane-dense (8, 128) partial-sum block: sublane 0/1/2 = mse/smooth/sam.
    row = jax.lax.broadcasted_iota(jnp.int32, (1, 8, _LANES), 1)
    sums_ref[...] = jnp.where(
        row == 0, mse_sum,
        jnp.where(row == 1, smooth_sum,
                  jnp.where(row == 2, sam_sum, 0.0))).astype(jnp.float32)


def _vmem_capacity_bytes():
    try:
        cap = getattr(pltpu.get_tpu_info(), "vmem_capacity_bytes", None)
        if cap:
            return int(cap)
    except Exception:
        pass
    return 64 * 1024 * 1024   # conservative default (v7x per-TC VMEM)


def _pick_tiling(hw, c, vmem_cap):
    """Rows-per-tile (sublane dim), number of tiles, padded total row count."""
    # Per-input-block budget counted in f32 bytes: the in-kernel temporaries
    # are block-sized f32 arrays, so this also bounds compiler scratch.
    block_budget = max(vmem_cap // 16, 512 * 1024)
    rows_cap = max(8, (block_budget // (c * _LANES * 4)) // 8 * 8)
    rows_needed = pl.cdiv(hw, _LANES)
    if rows_needed <= rows_cap:
        tile_rows = rows_needed            # single tile; block dim == array dim
        num_tiles = 1
    else:
        tile_rows = rows_cap               # multiple of 8
        num_tiles = pl.cdiv(rows_needed, tile_rows)
    return tile_rows, num_tiles, num_tiles * tile_rows


def fusion_loss(pred, target, lambda_sam=0.2, lambda_mse=0.6, lambda_smooth=0.2):
    """pred, target: (B, C, H, W) (NCHW, matching the PyTorch module)."""
    B, C, H, W = pred.shape
    HW = H * W

    vmem_cap = _vmem_capacity_bytes()
    tile_rows, num_tiles, rows_padded = _pick_tiling(HW, C, vmem_cap)
    HW_pad = rows_padded * _LANES
    needs_mask = HW_pad != HW

    p = pred.reshape(B, C, HW)
    t = target.reshape(B, C, HW)
    if needs_mask:
        p = jnp.pad(p, ((0, 0), (0, 0), (0, HW_pad - HW)))
        t = jnp.pad(t, ((0, 0), (0, 0), (0, HW_pad - HW)))
    # Free view: pixels move onto the (sublane, lane) axes, channels leading.
    p = p.reshape(B, C, rows_padded, _LANES)
    t = t.reshape(B, C, rows_padded, _LANES)

    # VMEM limit sized to the actual resident footprint (2 inputs x 2 pipeline
    # buffers + ~6 block-sized f32 temporaries + output blocks + headroom).
    itemsize = jnp.dtype(pred.dtype).itemsize
    block_in = C * tile_rows * _LANES * itemsize
    block_f32 = C * tile_rows * _LANES * 4
    footprint = 4 * block_in + 6 * block_f32 + 2 * 8 * _LANES * 4 + (2 << 20)
    vmem_limit = max(32 << 20, footprint)
    vmem_limit = min(vmem_limit, vmem_cap - (8 << 20))
    vmem_limit = max(vmem_limit, 16 << 20)

    kernel = functools.partial(_fusion_loss_kernel, hw=HW,
                               tile_rows=tile_rows, needs_mask=needs_mask)

    sums = pl.pallas_call(
        kernel,
        grid=(B, num_tiles),
        in_specs=[
            pl.BlockSpec((1, C, tile_rows, _LANES), lambda b, i: (b, 0, i, 0)),
            pl.BlockSpec((1, C, tile_rows, _LANES), lambda b, i: (b, 0, i, 0)),
        ],
        out_specs=pl.BlockSpec((1, 8, _LANES), lambda b, i: (b, i, 0)),
        out_shape=jax.ShapeDtypeStruct((B, num_tiles * 8, _LANES), jnp.float32),
        compiler_params=pltpu.CompilerParams(
            dimension_semantics=("parallel", "parallel"),
            vmem_limit_bytes=int(vmem_limit)),
    )(p, t)

    partials = sums.reshape(B, num_tiles, 8, _LANES)
    mse_total = jnp.sum(partials[:, :, 0, 0])
    smooth_total = jnp.sum(partials[:, :, 1, 0])
    sam_total = jnp.sum(partials[:, :, 2, 0])

    n_elem = float(B * C * HW)
    n_pix = float(B * HW)
    return (lambda_sam * (sam_total / n_pix)
            + lambda_mse * (mse_total / n_elem)
            + lambda_smooth * (smooth_total / n_elem))


def _reference_fusion_loss(pred, target,
                           lambda_sam=0.2, lambda_mse=0.6, lambda_smooth=0.2,
                           eps=1e-8):
    B, C, H, W = pred.shape
    pf = pred.reshape(B, C, -1)
    tf = target.reshape(B, C, -1)
    dot = jnp.sum(pf * tf, axis=1)
    pn = jnp.sqrt(jnp.sum(pf * pf, axis=1))
    tn = jnp.sqrt(jnp.sum(tf * tf, axis=1))
    cos = dot / (pn * tn + eps)
    sam = jnp.mean(jnp.arccos(jnp.clip(cos, -1.0, 1.0)))
    mse = jnp.mean((pred - target) ** 2)
    d = jnp.abs(pred - target)
    smooth = jnp.mean(jnp.where(d < 1.0, 0.5 * d * d, d - 0.5))
    return lambda_sam * sam + lambda_mse * mse + lambda_smooth * smooth


if __name__ == "__main__":
    key = jax.random.PRNGKey(0)
    k1, k2 = jax.random.split(key)
    B, C, H, W = 2, 4, 16, 16
    pred = jax.random.uniform(k1, (B, C, H, W), dtype=jnp.float32)
    target = jax.random.uniform(k2, (B, C, H, W), dtype=jnp.float32)

    loss = fusion_loss(pred, target)
    loss = jax.block_until_ready(loss)

    ref = _reference_fusion_loss(pred, target)
    assert jnp.allclose(loss, ref, atol=1e-5, rtol=1e-5), (loss, ref)

    print("KERNEL_OK")
</pallas_src>

<mosaic_0001>
module attributes {stable_mosaic.version = 11 : i64} {
  func.func @_fusion_loss_kernel(%arg0: i32, %arg1: i32, %arg2: memref<1x4x2x128xf32, #tpu.memory_space<vmem>>, %arg3: memref<1x4x2x128xf32, #tpu.memory_space<vmem>>, %arg4: memref<1x8x128xf32, #tpu.memory_space<vmem>>) attributes {dimension_semantics = [#tpu.dimension_semantics<parallel>, #tpu.dimension_semantics<parallel>], iteration_bounds = array<i64: 2, 1>, scalar_prefetch = 0 : i64, scratch_operands = 0 : i64, tpu.core_type = #tpu.core_type<tc>, window_params = [{transform_indices = @transform_0, window_bounds = array<i64: 1, 4, 2, 128>}, {transform_indices = @transform_1, window_bounds = array<i64: 1, 4, 2, 128>}, {transform_indices = @transform_2, window_bounds = array<i64: 1, 8, 128>}]} {
    %c0 = arith.constant 0 : index
    %c0_0 = arith.constant 0 : index
    %c0_1 = arith.constant 0 : index
    %c0_2 = arith.constant 0 : index
    %0 = vector.load %arg2[%c0, %c0_0, %c0_1, %c0_2] : memref<1x4x2x128xf32, #tpu.memory_space<vmem>>, vector<1x4x2x128xf32>
    %1 = vector.shape_cast %0 : vector<1x4x2x128xf32> to vector<4x2x128xf32>
    %c0_3 = arith.constant 0 : index
    %c0_4 = arith.constant 0 : index
    %c0_5 = arith.constant 0 : index
    %c0_6 = arith.constant 0 : index
    %2 = vector.load %arg3[%c0_3, %c0_4, %c0_5, %c0_6] : memref<1x4x2x128xf32, #tpu.memory_space<vmem>>, vector<1x4x2x128xf32>
    %3 = vector.shape_cast %2 : vector<1x4x2x128xf32> to vector<4x2x128xf32>
    %4 = arith.subf %1, %3 : vector<4x2x128xf32>
    %5 = arith.mulf %4, %4 : vector<4x2x128xf32>
    %6 = vector.shape_cast %5 : vector<4x2x128xf32> to vector<1x4x2x128xf32>
    %cst = arith.constant dense<0.000000e+00> : vector<1xf32>
    %7 = vector.multi_reduction <add>, %6, %cst [1, 2, 3] : vector<1x4x2x128xf32> to vector<1xf32>
    %8 = vector.shape_cast %7 : vector<1xf32> to vector<1x1x1x1xf32>
    %9 = vector.extract %8[0, 0, 0, 0] : f32 from vector<1x1x1x1xf32>
    %10 = math.absf %4 : vector<4x2x128xf32>
    %cst_7 = arith.constant 1.000000e+00 : f32
    %11 = vector.broadcast %cst_7 : f32 to vector<4x2x128xf32>
    %12 = arith.cmpf olt, %10, %11 : vector<4x2x128xf32>
    %cst_8 = arith.constant 5.000000e-01 : f32
    %13 = vector.broadcast %cst_8 : f32 to vector<4x2x128xf32>
    %14 = arith.mulf %13, %5 : vector<4x2x128xf32>
    %cst_9 = arith.constant 5.000000e-01 : f32
    %15 = vector.broadcast %cst_9 : f32 to vector<4x2x128xf32>
    %16 = arith.subf %10, %15 : vector<4x2x128xf32>
    %17 = arith.select %12, %14, %16 : vector<4x2x128xi1>, vector<4x2x128xf32>
    %18 = vector.shape_cast %17 : vector<4x2x128xf32> to vector<1x4x2x128xf32>
    %cst_10 = arith.constant dense<0.000000e+00> : vector<1xf32>
    %19 = vector.multi_reduction <add>, %18, %cst_10 [1, 2, 3] : vector<1x4x2x128xf32> to vector<1xf32>
    %20 = vector.shape_cast %19 : vector<1xf32> to vector<1x1x1x1xf32>
    %21 = vector.extract %20[0, 0, 0, 0] : f32 from vector<1x1x1x1xf32>
    %22 = arith.mulf %1, %3 : vector<4x2x128xf32>
    %cst_11 = arith.constant dense<0.000000e+00> : vector<2x128xf32>
    %23 = vector.multi_reduction <add>, %22, %cst_11 [0] : vector<4x2x128xf32> to vector<2x128xf32>
    %24 = arith.mulf %1, %1 : vector<4x2x128xf32>
    %cst_12 = arith.constant dense<0.000000e+00> : vector<2x128xf32>
    %25 = vector.multi_reduction <add>, %24, %cst_12 [0] : vector<4x2x128xf32> to vector<2x128xf32>
    %26 = math.sqrt %25 : vector<2x128xf32>
    %27 = arith.mulf %3, %3 : vector<4x2x128xf32>
    %cst_13 = arith.constant dense<0.000000e+00> : vector<2x128xf32>
    %28 = vector.multi_reduction <add>, %27, %cst_13 [0] : vector<4x2x128xf32> to vector<2x128xf32>
    %29 = math.sqrt %28 : vector<2x128xf32>
    %30 = arith.mulf %26, %29 : vector<2x128xf32>
    %cst_14 = arith.constant 9.99999993E-9 : f32
    %31 = vector.broadcast %cst_14 : f32 to vector<2x128xf32>
    %32 = arith.addf %30, %31 : vector<2x128xf32>
    %33 = arith.divf %23, %32 : vector<2x128xf32>
    %cst_15 = arith.constant -1.000000e+00 : f32
    %cst_16 = arith.constant 1.000000e+00 : f32
    %34 = vector.broadcast %cst_15 : f32 to vector<2x128xf32>
    %35 = arith.maximumf %34, %33 : vector<2x128xf32>
    %36 = vector.broadcast %cst_16 : f32 to vector<2x128xf32>
    %37 = arith.minimumf %36, %35 : vector<2x128xf32>
    %38 = math.absf %37 : vector<2x128xf32>
    %cst_17 = arith.constant -0.0012624911 : f32
    %39 = vector.broadcast %cst_17 : f32 to vector<2x128xf32>
    %40 = arith.mulf %39, %38 : vector<2x128xf32>
    %cst_18 = arith.constant 6.670090e-03 : f32
    %41 = vector.broadcast %cst_18 : f32 to vector<2x128xf32>
    %42 = arith.addf %40, %41 : vector<2x128xf32>
    %43 = arith.mulf %42, %38 : vector<2x128xf32>
    %cst_19 = arith.constant -0.0170881264 : f32
    %44 = vector.broadcast %cst_19 : f32 to vector<2x128xf32>
    %45 = arith.addf %43, %44 : vector<2x128xf32>
    %46 = arith.mulf %45, %38 : vector<2x128xf32>
    %cst_20 = arith.constant 0.0308918804 : f32
    %47 = vector.broadcast %cst_20 : f32 to vector<2x128xf32>
    %48 = arith.addf %46, %47 : vector<2x128xf32>
    %49 = arith.mulf %48, %38 : vector<2x128xf32>
    %cst_21 = arith.constant -0.0501743034 : f32
    %50 = vector.broadcast %cst_21 : f32 to vector<2x128xf32>
    %51 = arith.addf %49, %50 : vector<2x128xf32>
    %52 = arith.mulf %51, %38 : vector<2x128xf32>
    %cst_22 = arith.constant 0.0889789909 : f32
    %53 = vector.broadcast %cst_22 : f32 to vector<2x128xf32>
    %54 = arith.addf %52, %53 : vector<2x128xf32>
    %55 = arith.mulf %54, %38 : vector<2x128xf32>
    %cst_23 = arith.constant -0.214598805 : f32
    %56 = vector.broadcast %cst_23 : f32 to vector<2x128xf32>
    %57 = arith.addf %55, %56 : vector<2x128xf32>
    %58 = arith.mulf %57, %38 : vector<2x128xf32>
    %cst_24 = arith.constant 1.57079625 : f32
    %59 = vector.broadcast %cst_24 : f32 to vector<2x128xf32>
    %60 = arith.addf %58, %59 : vector<2x128xf32>
    %cst_25 = arith.constant 1.000000e+00 : f32
    %61 = vector.broadcast %cst_25 : f32 to vector<2x128xf32>
    %62 = arith.subf %61, %38 : vector<2x128xf32>
    %cst_26 = arith.constant 0.000000e+00 : f32
    %63 = vector.broadcast %cst_26 : f32 to vector<2x128xf32>
    %64 = arith.maximumf %62, %63 : vector<2x128xf32>
    %65 = math.sqrt %64 : vector<2x128xf32>
    %66 = arith.mulf %65, %60 : vector<2x128xf32>
    %cst_27 = arith.constant 0.000000e+00 : f32
    %67 = vector.broadcast %cst_27 : f32 to vector<2x128xf32>
    %68 = arith.cmpf oge, %37, %67 : vector<2x128xf32>
    %cst_28 = arith.constant 3.14159274 : f32
    %69 = vector.broadcast %cst_28 : f32 to vector<2x128xf32>
    %70 = arith.subf %69, %66 : vector<2x128xf32>
    %71 = arith.select %68, %66, %70 : vector<2x128xi1>, vector<2x128xf32>
    %72 = vector.shape_cast %71 : vector<2x128xf32> to vector<1x2x128xf32>
    %cst_29 = arith.constant dense<0.000000e+00> : vector<1xf32>
    %73 = vector.multi_reduction <add>, %72, %cst_29 [1, 2] : vector<1x2x128xf32> to vector<1xf32>
    %74 = vector.shape_cast %73 : vector<1xf32> to vector<1x1x1xf32>
    %75 = vector.extract %74[0, 0, 0] : f32 from vector<1x1x1xf32>
    %76 = tpu.iota {dimensions = array<i32: 1>} : vector<1x8x128xi32>
    %c0_i32 = arith.constant 0 : i32
    %77 = vector.broadcast %c0_i32 : i32 to vector<1x8x128xi32>
    %78 = arith.cmpi eq, %76, %77 : vector<1x8x128xi32>
    %c1_i32 = arith.constant 1 : i32
    %79 = vector.broadcast %c1_i32 : i32 to vector<1x8x128xi32>
    %80 = arith.cmpi eq, %76, %79 : vector<1x8x128xi32>
    %c2_i32 = arith.constant 2 : i32
    %81 = vector.broadcast %c2_i32 : i32 to vector<1x8x128xi32>
    %82 = arith.cmpi eq, %76, %81 : vector<1x8x128xi32>
    %cst_30 = arith.constant 0.000000e+00 : f32
    %83 = vector.broadcast %75 : f32 to vector<1x8x128xf32>
    %84 = vector.broadcast %cst_30 : f32 to vector<1x8x128xf32>
    %85 = arith.select %82, %83, %84 : vector<1x8x128xi1>, vector<1x8x128xf32>
    %86 = vector.broadcast %21 : f32 to vector<1x8x128xf32>
    %87 = arith.select %80, %86, %85 : vector<1x8x128xi1>, vector<1x8x128xf32>
    %88 = vector.broadcast %9 : f32 to vector<1x8x128xf32>
    %89 = arith.select %78, %88, %87 : vector<1x8x128xi1>, vector<1x8x128xf32>
    %c0_31 = arith.constant 0 : index
    %c0_32 = arith.constant 0 : index
    %c0_33 = arith.constant 0 : index
    %90 = vector.load %arg4[%c0_31, %c0_32, %c0_33] : memref<1x8x128xf32, #tpu.memory_space<vmem>>, vector<1x8x128xf32>
    tpu.vector_store %arg4[%c0_31, %c0_32, %c0_33], %89 {strides = array<i32>} : memref<1x8x128xf32, #tpu.memory_space<vmem>>, vector<1x8x128xf32>,
    return
  }
  func.func @transform_0(%arg0: i32, %arg1: i32) -> (i32, i32, i32, i32) {
    %c0_i32 = arith.constant 0 : i32
    %c0_i32_0 = arith.constant 0 : i32
    %c0_i32_1 = arith.constant 0 : i32
    return %arg0, %c0_i32, %arg1, %c0_i32_0 : i32, i32, i32, i32
  }
  func.func @transform_1(%arg0: i32, %arg1: i32) -> (i32, i32, i32, i32) {
    %c0_i32 = arith.constant 0 : i32
    %c0_i32_0 = arith.constant 0 : i32
    %c0_i32_1 = arith.constant 0 : i32
    return %arg0, %c0_i32, %arg1, %c0_i32_0 : i32, i32, i32, i32
  }
  func.func @transform_2(%arg0: i32, %arg1: i32) -> (i32, i32, i32) {
    %c0_i32 = arith.constant 0 : i32
    %c0_i32_0 = arith.constant 0 : i32
    return %arg0, %arg1, %c0_i32 : i32, i32, i32
  }
}

</mosaic_0001>

<bundles_post_ra>
// kernel: tpu_custom_call.1
= control target key start
LH: loop header
LB: loop body
LE: loop exit
PB: predicated region body
PF: predicated region fallthrough
CT: control target
= control target key end

     0   :  { %7 = vsyncpa [#allocation3], 0  ;;  %s1123_s0 = inlined_call_operand.hbm [shape: f32[2,4,2,128], index: 0, kind: input, shape index: {}]   ;;  %s1124_s1 = inlined_call_operand.hbm [shape: f32[2,4,2,128], index: 1, kind: input, shape index: {}]   ;;  %s1125_s2 = inlined_call_operand.hbm [shape: f32[2,8,128], index: 2, kind: output, shape index: {}]  }
   0x1   :  { %9 = vsyncpa [#allocation3 + $0x1], 0 }
   0x2   :  { %10 = vsyncpa [#allocation6], 0 }
   0x3   :  { %12 = vsyncpa [#allocation6 + $0x1], 0 }
   0x4   :  { %13 = vsyncpa [#allocation4], 0 }
   0x5   :  { %15 = vsyncpa [#allocation4 + $0x1], 0  ;;  %s791_s9 = smov 0   ;;  %s793_s10 = smov 0  }
   0x6   :  { %s795_s11 = smov 0   ;;  %s797_s12 = smov 0  }
   0x7   :  { %s799_s13 = smov 0   ;;  %s801_s14 = smov 0  }
   0x8 LB: > { %s515_s15 = sadd.s32 4294967295, %s769_s14   ;;  %s516_s16 = sadd.s32 4294967294, %s769_s14   ;;  %s769_s14 = sphi %s801_s14, %s21_s14   ;;  %s765_s13 = sphi %s799_s13, %s1151_s13   ;;  %s761_s12 = sphi %s797_s12, %s1150_s12   ;;  %s757_s11 = sphi %s795_s11, %s1149_s11   ;;  %s753_s10 = sphi %s793_s10, %s1148_s10   ;;  %s749_s9 = sphi %s791_s9, %s1147_s9  }
   0x9   : > { %s33_s17 = sadd.s32 1, %s765_s13  ;;  %s42_s18 = sadd.s32 1, %s757_s11 }
   0xa   : > { %p35_p0 = scmp.ge.s32.totalorder %s33_s17, 2  ;;  %p49_p1 = scmp.ne.s32.totalorder %s757_s11, %s753_s10 }
   0xb   : > { %p50_p2 = scmp.eq.s32.totalorder %s769_s14, 0  ;;  %p55_p3 = scmp.ne.s32.totalorder %s753_s10, %s749_s9 }
   0xc   : > { %s1153_s17 = smov (%p35_p0, %s33_s17), 0  ;;  %p56_p5 = scmp.eq.s32.totalorder %s515_s15, 0 }
   0xd   : > { %p832_p4 = por %p50_p2, %p49_p1  ;;  %s37_s20 = ssub.s32 %s765_s13, %s1153_s17 }
   0xe   : > { %p109_p6 = scmp.eq.s32.totalorder %s515_s15, 1  ;;  %p40_p7 = scmp.eq.s32.totalorder %s37_s20, 0 }
   0xf   : > { %p838_p8 = por %p56_p5, %p55_p3  ;;  %p115_p10 = scmp.eq.s32.totalorder %s516_s16, 1 }
  0x10   : > { %p842_p9 = por %p109_p6, %p49_p1  ;;  %p563_p13 = scmp.lt.s32.totalorder %s769_s14, 2 }
  0x11   : > { %s1129_s21 = scalar_select %p838_p8, 1, 0 }
  0x12   : > { %s1130_s22 = scalar_select %p842_p9, 1, 0 }
  0x13   : > { %s847_s23 = scalar_select %p40_p7, %s757_s11, %s42_s18  }
  0x14   : > { %p849_p11 = por %p115_p10, %p55_p3  ;;  %s856_s25 = sand.u32 1, %s757_s11  }
  0x15   : > { %s519_s26 = sshll.u32 %s856_s25, 3  ;;  %s538_s27 = sshll.u32 %s765_s13, 7 }
  0x16   : > { %s1131_s24 = scalar_select %p849_p11, 1, 0 }
  0x17   : > { %s865_s30 = scalar_lea.hbm %s1123_s0, %s538_s27  ;;  %s139_s3 = scalar_lea.vmem [#allocation2], %s519_s26 }
  0x18   : > { %s147_s4 = sshll.u32 %s139_s3, 4  ;;  %p873_p0 = pnand %p563_p13, %p832_p4  ;;  %s869_s4 = int_to_ptr.vmem [resolvable:$true] %s147_s4 }
  0x19   : > { %s136_s6 = scalar_lea.sflag [#allocation3], %s856_s25  ;;  %s623_s7 = scalar_lea.hbm %s865_s30, 128 }
  0x1a   : > { %p624_p2 = scmp.ne.s32.totalorder %s865_s30, %s623_s7  ;;  %p625_p3 = pneg %p873_p0 }
  0x1b   : > { %s628_s16 = scalar_lea.hbm %s1123_s0, 256  ;;  %p629_p4 = scmp.lt.u32.totalorder %s865_s30, %s1123_s0 }
  0x1c   : > { %p626_p5 = pnand %p625_p3, %p624_p2  ;;  %p630_p7 = scmp.lt.u32.totalorder %s628_s16, %s623_s7 }
  0x1d   : > { %p632_p13 = scmp.lt.u32.totalorder %s623_s7, %s865_s30 }
  0x1e   : > { %p627_p6 = pneg %p626_p5  ;;  %p631_p10 = por %p630_p7, %p629_p4 }
  0x20   : > { %p633_p12 = por %p632_p13, %p631_p10 }
  0x22   : > { %p634_p1 = pnand %p633_p12, %p627_p6 }
  0x24   : > { %637 = shalt.err (!%p634_p1)
}
  0x25   : > { %s638_s20 = scalar_lea.vmem %s869_s4, 128  ;;  %s771_s28 = smov [#allocation2]  }
  0x26   : > { %p639_p2 = scmp.ne.s32.totalorder %s869_s4, %s638_s20  ;;  %s643_s29 = sshll.u32 %s771_s28, 4  ;;  %s644_s29 = int_to_ptr.vmem [resolvable:$false] %s643_s29 }
  0x27   : > { %s645_s3 = scalar_lea.vmem %s644_s29, 256  ;;  %p646_p9 = scmp.lt.s32.totalorder %s869_s4, %s644_s29 }
  0x28   : > { %p641_p5 = pnand %p639_p2, %p625_p3  ;;  %p647_p4 = scmp.lt.s32.totalorder %s645_s3, %s638_s20 }
  0x2a   : > { %p642_p11 = pneg %p641_p5  ;;  %p648_p7 = por %p647_p4, %p646_p9 }
  0x2c   : > { %p649_p10 = pnand %p648_p7, %p642_p11 }
  0x2e   : > { %652 = shalt.err (!%p649_p10)
}
  0x2f   : > { %s772_s7 = smov 32   ;;  %s773_s8 = smov 2  }
  0x30   : > { %555 = dma.hbm_to_vmem [thread:$0]  (!%p873_p0), %s865_s30, 128, %s869_s4, %s136_s6, %s772_s7, %s772_s7, %s773_s8  }
  0x31   : > { %p177_p9 = scmp.lt.s32.totalorder %s769_s14, 3  ;;  %s915_s18 = scalar_lea.hbm %s1124_s1, %s538_s27 }
  0x32   : > { %p1133_p11 = scmp.ge.s32.totalorder %s769_s14, 1  ;;  %s161_s20 = scalar_lea.vmem [#allocation5], %s519_s26 }
  0x33   : > { %s169_s28 = sshll.u32 %s161_s20, 4  ;;  %s158_s30 = scalar_lea.sflag [#allocation6], %s856_s25  ;;  %s925_s28 = int_to_ptr.vmem [resolvable:$true] %s169_s28 }
  0x34   : > { %p919_p12 = pnand %p1133_p11, %p177_p9  ;;  %s653_s4 = scalar_lea.hbm %s915_s18, 128 }
  0x35   : > { %p654_p1 = scmp.ne.s32.totalorder %s915_s18, %s653_s4  ;;  %s658_s29 = scalar_lea.hbm %s1124_s1, 256 }
  0x36   : > { %p659_p2 = scmp.lt.u32.totalorder %s915_s18, %s1124_s1  ;;  %p660_p5 = scmp.lt.u32.totalorder %s658_s29, %s653_s4 }
  0x37   : > { %p656_p6 = pnand %p654_p1, %p625_p3  ;;  %p662_p7 = scmp.lt.u32.totalorder %s653_s4, %s915_s18 }
  0x38   : > { %p661_p4 = por %p660_p5, %p659_p2 }
  0x39   : > { %p657_p13 = pneg %p656_p6 }
  0x3a   : > { %p663_p10 = por %p662_p7, %p661_p4 }
  0x3c   : > { %p664_p9 = pnand %p663_p10, %p657_p13 }
  0x3e   : > { %667 = shalt.err (!%p664_p9)
}
  0x3f   : > { %s668_s26 = scalar_lea.vmem %s925_s28, 128  ;;  %s774_s16 = smov [#allocation5]  }
  0x40   : > { %p669_p11 = scmp.ne.s32.totalorder %s925_s28, %s668_s26  ;;  %s673_s20 = sshll.u32 %s774_s16, 4  ;;  %s674_s20 = int_to_ptr.vmem [resolvable:$false] %s673_s20 }
  0x41   : > { %s675_s27 = scalar_lea.vmem %s674_s20, 256  ;;  %p676_p8 = scmp.lt.s32.totalorder %s925_s28, %s674_s20 }
  0x42   : > { %p671_p1 = pnand %p669_p11, %p625_p3  ;;  %p677_p2 = scmp.lt.s32.totalorder %s675_s27, %s668_s26 }
  0x44   : > { %p672_p6 = pneg %p671_p1  ;;  %p678_p5 = por %p677_p2, %p676_p8 }
  0x46   : > { %p679_p4 = pnand %p678_p5, %p672_p6 }
  0x48   : > { %682 = shalt.err (!%p679_p4)
}
  0x49   : > { %558 = dma.hbm_to_vmem [thread:$0]  (!%p873_p0), %s915_s18, 128, %s925_s28, %s158_s30, %s772_s7, %s772_s7, %s773_s8  }
  0x4a   : > { %181 = sbr.rel (%p919_p12) target bundleno = 394 (0x18a), region = 28  ;;  %s959_s4 = sand.u32 (!%p919_p12), 1, %s753_s10  }
  0x4b   : > { %s962_s6 = sshll.u32 (!%p919_p12), %s959_s4, 3  ;;  %s184_s5 = scalar_lea.sflag (!%p919_p12), [#allocation3], %s959_s4 }
  0x4c   : > { %s187_s29 = scalar_lea.vmem (!%p919_p12), [#allocation2], %s962_s6  ;;  %p1135_p8 = scmp.ne.s32.totalorder (!%p919_p12), %s1129_s21, 0 }
  0x51   : > { %736 = dma.done.wait (%p1135_p8), %s184_s5, 128  }
  0x52   : > { %738 = vsyncadd (%p1135_p8), %s184_s5, 4294967168  ;;  %s193_s25 = scalar_lea.sflag [#allocation6], %s959_s4  ;;  %s196_s7 = scalar_lea.vmem [#allocation5], %s962_s6 }
  0x53   : > { %740 = dma.done.wait (%p1135_p8), %s193_s25, 128  }
  0x54   : > { %742 = vsyncadd (%p1135_p8), %s193_s25, 4294967168  ;;  %v976_v0 = vld [vmem:[%s187_s29] sm:$0x3]  ;;  %v978_v1 = vld [vmem:[%s187_s29 + $0x2] sm:$0x3]  ;;  %vm238_vm0 = vcmask 1041408  }
  0x55   : > { %v980_v2 = vld [vmem:[%s187_s29 + $0x4] sm:$0x3]  ;;  %v982_v3 = vld [vmem:[%s196_s7] sm:$0x3]  ;;  %v984_v4 = vld [vmem:[%s196_s7 + $0x2] sm:$0x3]  ;;  %v302_v10 = vmul.f32 %v976_v0, %v976_v0  ;;  %v303_v13 = vmul.f32 %v978_v1, %v978_v1 }
  0x56   : > { %v986_v5 = vld [vmem:[%s187_s29 + $0x6] sm:$0x3]  ;;  %v988_v6 = vld [vmem:[%s196_s7 + $0x4] sm:$0x3]  ;;  %v990_v7 = vld [vmem:[%s196_s7 + $0x6] sm:$0x3]  ;;  %v230_v8 = vsub.f32 %v976_v0, %v982_v3  ;;  %v231_v9 = vsub.f32 %v978_v1, %v984_v4  ;;  %v304_v14 = vmul.f32 %v980_v2, %v980_v2  ;;  %v320_v38 = vmul.f32 %v982_v3, %v982_v3 }
  0x57   : > { %v232_v11 = vsub.f32 %v980_v2, %v988_v6  ;;  %v233_v12 = vsub.f32 %v986_v5, %v990_v7  ;;  %v305_v32 = vmul.f32 %v986_v5, %v986_v5  ;;  %v306_v33 = vsel %vm238_vm0, %v302_v10, 0.0  ;;  %s535_s18 = sshll.u32 %s761_s12, 7  ;;  %s221_s28 = scalar_lea.vmem [#allocation7], %s962_s6 }
  0x58   : > { %v234_v15 = vmul.f32 %v230_v8, %v230_v8  ;;  %v235_v16 = vmul.f32 %v231_v9, %v231_v9  ;;  %v255_v17 = vand.u32 2147483647, %v230_v8  ;;  %v256_v18 = vand.u32 2147483647, %v231_v9  ;;  %s409_s30 = sshll.u32 %s221_s28, 4  ;;  %s1074_s26 = scalar_lea.hbm %s1125_s2, %s535_s18  ;;  %s1076_s30 = int_to_ptr.vmem [resolvable:$true] %s409_s30 }
  0x59   : > { %v236_v19 = vmul.f32 %v232_v11, %v232_v11  ;;  %v237_v20 = vmul.f32 %v233_v12, %v233_v12  ;;  %v257_v21 = vand.u32 2147483647, %v232_v11  ;;  %v258_v22 = vand.u32 2147483647, %v233_v12  ;;  %s395_s12 = scalar_lea.sflag [#allocation4], %s959_s4  ;;  %s683_s16 = scalar_lea.vmem %s1076_s30, 128 }
  0x5a   : > { %v239_v23 = vsel %vm238_vm0, %v234_v15, 0.0  ;;  %v240_v24 = vsel %vm238_vm0, %v235_v16, 0.0  ;;  %v263_v25 = vmul.f32 0.5, %v234_v15  ;;  %v264_v26 = vmul.f32 0.5, %v235_v16  ;;  %p684_p0 = scmp.ne.s32.totalorder %s1076_s30, %s683_s16  ;;  %p1144_p3 = scmp.ne.s32.totalorder %s1130_s22, 0 }
  0x5b   : > { %v241_v27 = vadd.f32 %v240_v24, %v239_v23  ;;  %v242_v28 = vsel %vm238_vm0, %v236_v19, 0.0  ;;  %v244_v29 = vsel %vm238_vm0, %v237_v20, 0.0  ;;  %v265_v30 = vmul.f32 0.5, %v236_v19  ;;  %s775_s20 = smov [#allocation7]  }
  0x5c   : > { %v266_v31 = vmul.f32 0.5, %v237_v20  ;;  %v307_v34 = vsel %vm238_vm0, %v303_v13, 0.0  ;;  %v309_v37 = vsel %vm238_vm0, %v304_v14, 0.0  ;;  %v311_v39 = vsel %vm238_vm0, %v305_v32, 0.0  ;;  %p685_p12 = pnand %p684_p0, %p1144_p3  ;;  %s687_s27 = sshll.u32 %s775_s20, 4  ;;  %s688_s27 = int_to_ptr.vmem [resolvable:$false] %s687_s27 }
  0x5d   : > { %v243_v35 = vadd.f32 %v242_v28, %v241_v27  ;;  %v308_v36 = vadd.f32 %v307_v34, %v306_v33  ;;  %v321_v40 = vmul.f32 %v984_v4, %v984_v4  ;;  %v322_v41 = vmul.f32 %v988_v6, %v988_v6  ;;  %s689_s6 = scalar_lea.vmem %s688_s27, 256  ;;  %p690_p7 = scmp.lt.s32.totalorder %s1076_s30, %s688_s27 }
  0x5e   : > { %v323_v42 = vmul.f32 %v990_v7, %v990_v7  ;;  %v324_v45 = vsel %vm238_vm0, %v320_v38, 0.0  ;;  %vm1025_vm1 = vcmp.lt.f32.partialorder %v255_v17, 1.0  ;;  %vm1032_vm2 = vcmp.lt.f32.partialorder %v256_v18, 1.0  ;;  %p686_p13 = pneg %p685_p12  ;;  %p691_p10 = scmp.lt.s32.totalorder %s689_s6, %s683_s16 }
  0x5f   : > { %v245_v43 = vadd.f32 %v244_v29, %v243_v35  ;;  %v310_v44 = vadd.f32 %v309_v37, %v308_v36  ;;  %v325_v47 = vsel %vm238_vm0, %v321_v40, 0.0  ;;  %v327_v48 = vsel %vm238_vm0, %v322_v41, 0.0 }
  0x60   : > { %v329_v49 = vsel %vm238_vm0, %v323_v42, 0.0  ;;  %v326_v52 = vadd.f32 %v325_v47, %v324_v45  ;;  %vm1036_vm3 = vcmp.lt.f32.partialorder %v257_v21, 1.0  ;;  %vm1040_vm4 = vcmp.lt.f32.partialorder %v258_v22, 1.0  ;;  %p692_p9 = por %p691_p10, %p690_p7 }
  0x61   : > { %v312_v51 = vadd.f32 %v311_v39, %v310_v44  ;;  %246 = vadd.xlane.f32.xlu0 %v245_v43  ;;  %v529_v55 = vadd.f32 -0.5, %v255_v17  ;;  %v530_v56 = vadd.f32 -0.5, %v256_v18  ;;  %v531_v57 = vadd.f32 -0.5, %v257_v21 }
  0x62   : > { %v532_v58 = vadd.f32 -0.5, %v258_v22  ;;  %v328_v59 = vadd.f32 %v327_v48, %v326_v52  ;;  %v291_v22 = vmul.f32 %v982_v3, %v976_v0  ;;  %v292_v23 = vmul.f32 %v984_v4, %v978_v1  ;;  %p693_p11 = pnand %p692_p9, %p686_p13 }
  0x63   : > { %615 = vrsqrt.f32 %v312_v51  ;;  %v271_v60 = vsel %vm1025_vm1, %v263_v25, %v529_v55  ;;  %v272_v61 = vsel %vm1032_vm2, %v264_v26, %v530_v56  ;;  %v273_v62 = vsel %vm1036_vm3, %v265_v30, %v531_v57 }
  0x64   : > { %v274_v63 = vsel %vm1040_vm4, %v266_v31, %v532_v58  ;;  %v330_v8 = vadd.f32 %v329_v49, %v328_v59  ;;  %v275_v9 = vsel %vm238_vm0, %v271_v60, 0.0  ;;  %v276_v10 = vsel %vm238_vm0, %v272_v61, 0.0 }
  0x65   : > { %v278_v11 = vsel %vm238_vm0, %v273_v62, 0.0  ;;  %v277_v12 = vadd.f32 %v276_v10, %v275_v9  ;;  %v280_v13 = vsel %vm238_vm0, %v274_v63, 0.0  ;;  %vm315_vm5 = vcmp.eq.f32.partialorder %v312_v51, inf }
  0x66   : > { %617 = vrsqrt.f32 %v330_v8  ;;  %v318_v18 = vand.u32 2147483648, %v312_v51  ;;  %vm317_vm6 = vcmp.eq.f32.partialorder %v312_v51, 0.0  ;;  %vm333_vm7 = vcmp.eq.f32.partialorder %v330_v8, inf }
  0x67   : > { %v279_v14 = vadd.f32 %v278_v11, %v277_v12  ;;  %v336_v21 = vand.u32 2147483648, %v330_v8  ;;  %vm335_vm8 = vcmp.eq.f32.partialorder %v330_v8, 0.0  ;;  %v293_v28 = vmul.f32 %v988_v6, %v980_v2 }
  0x68   : > { %v295_v29 = vsel %vm238_vm0, %v291_v22, 0.0  ;;  %v296_v30 = vsel %vm238_vm0, %v292_v23, 0.0  ;;  %v294_v0 = vmul.f32 %v990_v7, %v986_v5 }
  0x69   : > { %v281_v15 = vadd.f32 %v280_v13, %v279_v14  ;;  %v297_v33 = vadd.f32 %v296_v30, %v295_v29  ;;  %v298_v1 = vsel %vm238_vm0, %v293_v28, 0.0 }
  0x6a   : > { %v300_v4 = vsel %vm238_vm0, %v294_v0, 0.0 }
  0x6b   : > { %282 = vadd.xlane.f32.xlu0 %v281_v15  ;;  %v299_v3 = vadd.f32 %v298_v1, %v297_v33 }
  0x6d   : > { %v616_v16 = vpop.eup %615  ;;  %v301_v34 = vadd.f32 %v300_v4, %v299_v3 }
  0x6e   : > { %v314_v17 = vmul.f32 %v616_v16, %v312_v51 }
  0x70   : > { %v316_v19 = vsel %vm315_vm5, %v312_v51, %v314_v17  ;;  %v618_v20 = vpop.eup %617 }
  0x71   : > { %v332_v24 = vmul.f32 %v618_v20, %v330_v8  ;;  %v319_v25 = vsel %vm317_vm6, %v318_v18, %v316_v19 }
  0x73   : > { %v334_v26 = vsel %vm333_vm7, %v330_v8, %v332_v24 }
  0x74   : > { %v337_v27 = vsel %vm335_vm8, %v336_v21, %v334_v26 }
  0x75   : > { %v338_v31 = vmul.f32 %v337_v27, %v319_v25  ;;  %v382_v25 = vlaneseq }
  0x77   : > { %v339_v32 = vadd.f32 1e-08, %v338_v31  ;;  %v383_v26 = vshrl.u32 %v382_v25, 7 }
  0x79   : > { %619 = vrcp.f32 %v339_v32  ;;  %vm386_vm12 = vcmp.eq.s32.totalorder %v383_v26, 2  ;;  %vm385_vm13 = vcmp.eq.s32.totalorder %v383_v26, 1  ;;  %vm384_vm14 = vcmp.eq.s32.totalorder %v383_v26, 0 }
  0x83   : > { %v620_v35 = vpop.eup %619 }
  0x84   : > { %v341_v36 = vmul.f32 %v620_v35, %v301_v34 }
  0x86   : > { %v533_v2 = vclamps-f32 %v341_v36, 1.0 }
  0x88   : > { %v344_v6 = vand.u32 2147483647, %v533_v2  ;;  %vm369_vm11 = vcmp.ge.f32.partialorder %v533_v2, 0.0 }
  0x8a   : > { %v345_v37 = vmul.f32 -0.0012624911, %v344_v6  ;;  %v359_v38 = vsub.f32 1.0, %v344_v6 }
  0x8c   : > { %v346_v39 = vadd.f32 0.00667009, %v345_v37  ;;  %v360_v40 = vmax.f32 %v359_v38, 0.0 }
  0x8e   : > { %v347_v41 = vmul.f32 %v346_v39, %v344_v6  ;;  %621 = vrsqrt.f32 %v360_v40  ;;  %vm363_vm9 = vcmp.eq.f32.partialorder %v360_v40, inf  ;;  %v366_v50 = vand.u32 2147483648, %v360_v40 }
  0x8f   : > { %vm365_vm10 = vcmp.eq.f32.partialorder %v360_v40, 0.0 }
  0x90   : > { %v348_v42 = vadd.f32 -0.017088126, %v347_v41 }
  0x92   : > { %v349_v43 = vmul.f32 %v348_v42, %v344_v6 }
  0x94   : > { %v350_v5 = vadd.f32 0.03089188, %v349_v43 }
  0x96   : > { %v351_v7 = vmul.f32 %v350_v5, %v344_v6 }
  0x98   : > { %v352_v44 = vadd.f32 -0.050174303, %v351_v7  ;;  %v622_v45 = vpop.eup %621 }
  0x99   : > { %v362_v48 = vmul.f32 %v622_v45, %v360_v40 }
  0x9a   : > { %v353_v46 = vmul.f32 %v352_v44, %v344_v6 }
  0x9b   : > { %v364_v52 = vsel %vm363_vm9, %v360_v40, %v362_v48 }
  0x9c   : > { %v354_v47 = vadd.f32 0.08897899, %v353_v46  ;;  %v367_v54 = vsel %vm365_vm10, %v366_v50, %v364_v52 }
  0x9e   : > { %v355_v49 = vmul.f32 %v354_v47, %v344_v6 }
  0xa0   : > { %v356_v51 = vadd.f32 -0.2145988, %v355_v49 }
  0xa2   : > { %v357_v53 = vmul.f32 %v356_v51, %v344_v6 }
  0xa4   : > { %v358_v55 = vadd.f32 1.5707963, %v357_v53 }
  0xa6   : > { %v368_v56 = vmul.f32 %v367_v54, %v358_v55 }
  0xa8   : > { %v370_v57 = vsub.f32 3.1415927, %v368_v56 }
  0xaa   : > { %v371_v58 = vsel %vm369_vm11, %v368_v56, %v370_v57 }
  0xab   : > { %v372_v59 = vsel %vm238_vm0, %v371_v58, 0.0 }
  0xac   : > { %373 = vadd.xlane.f32.xlu1 %v372_v59 }
  0xee   : > { %v247_v60 = vpop.xlane.xlu0 %246 }
  0xef   : > { %v248_v61 = vrot.slane %v247_v60, 4 }
  0xf1   : > { %v249_v62 = vadd.f32 %v248_v61, %v247_v60 }
  0xf3   : > { %v250_v63 = vrot.slane %v249_v62, 2 }
  0xf5   : > { %v251_v8 = vadd.f32 %v250_v63, %v249_v62 }
  0xf7   : > { %v252_v9 = vrot.slane %v251_v8, 1 }
  0xf8   : > { %v283_v10 = vpop.xlane.xlu0 %282 }
  0xf9   : > { %v253_v11 = vadd.f32 %v252_v9, %v251_v8  ;;  %v284_v12 = vrot.slane %v283_v10, 4 }
  0xfb   : > { %540 = vpush %v253_v11  ;;  %v285_v13 = vadd.f32 %v284_v12, %v283_v10 }
  0xfd   : > { %v286_v14 = vrot.slane %v285_v13, 2 }
  0xff   : > { %v287_v15 = vadd.f32 %v286_v14, %v285_v13 }
 0x101   : > { %v288_v16 = vrot.slane %v287_v15, 1 }
 0x103   : > { %v289_v17 = vadd.f32 %v288_v16, %v287_v15 }
 0x105   : > { %542 = vpush %v289_v17 }
 0x12c   : > { %s541_s21 = spop %540 }
 0x12d   : > { %v391_v30 = vstv %s541_s21 }
 0x136   : > { %s543_s8 = spop %542 }
 0x137   : > { %v389_v28 = vstv %s543_s8 }
 0x139   : > { %v374_v18 = vpop.xlane.xlu1 %373 }
 0x13a   : > { %v375_v19 = vrot.slane %v374_v18, 4 }
 0x13c   : > { %v376_v20 = vadd.f32 %v375_v19, %v374_v18 }
 0x13e   : > { %v377_v21 = vrot.slane %v376_v20, 2 }
 0x140   : > { %v378_v22 = vadd.f32 %v377_v21, %v376_v20 }
 0x142   : > { %v379_v23 = vrot.slane %v378_v22, 1 }
 0x144   : > { %v380_v24 = vadd.f32 %v379_v23, %v378_v22 }
 0x146   : > { %544 = vpush %v380_v24 }
 0x177   : > { %s545_s19 = spop %544 }
 0x178   : > { %v387_v27 = vstv %s545_s19 }
 0x179   : > { %v388_v29 = vsel %vm386_vm12, %v387_v27, 0.0 }
 0x17a   : > { %v390_v31 = vsel %vm385_vm13, %v389_v28, %v388_v29 }
 0x17b   : > { %v392_v32 = vsel %vm384_vm14, %v391_v30, %v390_v31 }
 0x17c   : > { %393 = vst [vmem:[%s221_s28] sm:$0xff] %v392_v32 }
 0x17d   : > { %696 = shalt.err (!%p693_p11)
}
 0x17e   : > { %s697_s4 = scalar_lea.hbm %s1074_s26, 128  ;;  %s701_s25 = scalar_lea.hbm %s1125_s2, 256 }
 0x17f   : > { %p698_p1 = scmp.ne.s32.totalorder %s1074_s26, %s697_s4  ;;  %p702_p5 = scmp.lt.u32.totalorder %s1074_s26, %s1125_s2 }
 0x180   : > { %p703_p4 = scmp.lt.u32.totalorder %s701_s25, %s697_s4  ;;  %p705_p0 = scmp.lt.u32.totalorder %s697_s4, %s1074_s26 }
 0x181   : > { %p699_p6 = pnand %p698_p1, %p1144_p3 }
 0x182   : > { %p704_p8 = por %p703_p4, %p702_p5 }
 0x183   : > { %p700_p2 = pneg %p699_p6 }
 0x184   : > { %p706_p12 = por %p705_p0, %p704_p8 }
 0x186   : > { %p707_p13 = pnand %p706_p12, %p700_p2 }
 0x188   : > { %710 = shalt.err (!%p707_p13)
}
 0x189   : > { %550 = dma.vmem_to_hbm [thread:$0]  (%p1144_p3), %s1076_s30, 128, %s1074_s26, %s395_s12  }
 0x18a PF: > { %s421_s8 = sand.u32 1, %s749_s9   ;;  %p1145_p7 = scmp.ne.s32.totalorder %s1131_s24, 0 }
 0x18b   : > { %p1146_p10 = scmp.ge.s32.totalorder %s769_s14, 2  ;;  %s422_s18 = scalar_lea.sflag [#allocation4], %s421_s8 }
 0x18d   : > { %p560_p9 = pnand %p1146_p10, %p1145_p7 }
 0x18f   : > { %744 = dma.done.wait (!%p560_p9), %s422_s18, 128  }
 0x190   : > { %746 = vsyncadd (!%p560_p9), %s422_s18, 4294967168  ;;  %s21_s14 = sadd.s32 1, %s769_s14   ;;  %s1147_s9 = smov %s753_s10 }
 0x191   : > { %p18_p11 = scmp.ge.s32.totalorder %s21_s14, 4   ;;  %s1148_s10 = smov %s757_s11 }
 0x192   : > { %s1149_s11 = smov %s847_s23  ;;  %s1150_s12 = smov %s765_s13 }
 0x193   : > { %s1151_s13 = smov %s1153_s17  ;;  %20 = sbr.rel (!%p18_p11) target bundleno = 8 (0x8), region = 86 }
 0x19a   :  { %427 = vsyncpa [#allocation3], 1 }
 0x19b   :  { %429 = vsyncpa [#allocation3 + $0x1], 1 }
 0x19c   :  { %430 = vsyncpa [#allocation6], 1 }
 0x19d   :  { %432 = vsyncpa [#allocation6 + $0x1], 1 }
 0x19e   :  { %433 = vsyncpa [#allocation4], 1 }
 0x19f   :  { %435 = vsyncpa [#allocation4 + $0x1], 1 }

</bundles_post_ra>
